<compile_context>
chip_gen: v7x
topology: tpu7x:2x2x1
jax: 0.10.0
libtpu: 0.0.40
codegen_flags: <defaults>
</compile_context>

<pallas_src>
import jax
import jax.numpy as jnp
from jax.experimental import pallas as pl
from jax.experimental.pallas import tpu as pltpu


def _round_up(x, m):
    return (x + m - 1) // m * m


def _proj_kernel(p_ref, w_ref, b_ref, o_ref):
    # p_ref: (TM, K) streamed patch tile;  w_ref: (K, E_pad) resident weight
    # b_ref: (1, E_pad) resident f32 bias; o_ref: (TM, E_pad) output tile
    acc = jnp.dot(p_ref[...], w_ref[...], preferred_element_type=jnp.float32)
    o_ref[...] = (acc + b_ref[...]).astype(o_ref.dtype)


def _vmem_capacity_bytes():
    try:
        return int(pltpu.get_tpu_info().vmem_capacity_bytes)
    except Exception:
        return 64 * 1024 * 1024  # conservative fallback (v7x per-TC VMEM)


def _pick_tile_m(M, K, E_pad, in_sz, out_sz, tile_m):
    """Generation-aware M-tile: as big as VMEM allows, always a multiple of 8,
    and >= 2 tiles when there is enough work (so both v7x TCs get tiles)."""
    M8 = _round_up(M, 8)
    vmem_cap = _vmem_capacity_bytes()
    budget = int(vmem_cap * 0.45)                       # headroom for scratch/overheads
    resident = 2 * K * E_pad * in_sz + 2 * 8 * E_pad * 4  # dbl-buffered weight + bias
    per_row = 2 * (K * in_sz + E_pad * out_sz)           # dbl-buffered input + output rows
    tm_cap = max(256, (budget - resident) // max(per_row, 1))
    tm = tile_m if tile_m is not None else min(2048, tm_cap)
    if tm >= 256:
        tm = (tm // 256) * 256          # MXU / lane friendly when large
    tm = max(8, (tm // 8) * 8)          # ALWAYS sublane-aligned (correctness fix)
    tm = min(tm, M8)
    if M8 >= 512:                       # keep >= 2 tiles for megacore sharding
        tm = min(tm, _round_up((M8 + 1) // 2, 256))
    return tm, vmem_cap


def patch_embed_forward(x, weight, bias, patch_size, *, tile_m=None,
                        input_dtype=jnp.bfloat16, out_dtype=None,
                        return_tokens=False, w_flat=None):
    """x: (B, C, H, W); weight: (E, C, ph, pw); bias: (E,).

    Returns (B, E, Hp, Wp) (NCHW, matching nn.Conv2d) or (B, Hp*Wp, E) if
    return_tokens=True (skips the trailing layout transpose).
    Pass a precomputed (K, E) `w_flat` to hoist the per-call weight prep.
    """
    B, C, H, W = x.shape
    E = weight.shape[0]
    ph, pw = patch_size
    Hp, Wp = H // ph, W // pw
    M = B * Hp * Wp
    K = C * ph * pw

    input_dtype = jnp.dtype(input_dtype) if input_dtype is not None else x.dtype
    out_dtype = jnp.dtype(out_dtype) if out_dtype is not None else x.dtype

    # ---- embed-dim lane padding: only when it buys lane-dense stores without
    # inflating output bytes (typical 256/512/768 need none; tiny E keeps its
    # natural width — masked stores beat 4x the write traffic). ----
    if E % 128 == 0 or E < 128:
        E_pad = E
    else:
        E_pad = _round_up(E, 128)

    # ---- parameters: Conv2d weight -> (K, E) with K-minor order (c, ph, pw) ----
    if w_flat is None:
        w_flat = weight.reshape(E, K).T
    w_flat = w_flat.astype(input_dtype)
    b_row = bias.reshape(1, E).astype(jnp.float32)
    if E_pad != E:
        w_flat = jnp.pad(w_flat, ((0, 0), (0, E_pad - E)))
        b_row = jnp.pad(b_row, ((0, 0), (0, E_pad - E)))

    # ---- patchify (layout only). Cast FIRST so the transpose copy moves half
    # the bytes; allow_input_fusion lets XLA fuse this chain into the kernel's
    # input DMA instead of an extra HBM round-trip. ----
    xs = x.astype(input_dtype)
    patches = xs.reshape(B, C, Hp, ph, Wp, pw)
    patches = jnp.transpose(patches, (0, 2, 4, 1, 3, 5))
    patches = patches.reshape(M, K)

    in_sz = jnp.dtype(input_dtype).itemsize
    out_sz = jnp.dtype(out_dtype).itemsize
    TM, vmem_cap = _pick_tile_m(M, K, E_pad, in_sz, out_sz, tile_m)
    M_pad = _round_up(M, TM)
    if M_pad != M:
        patches = jnp.pad(patches, ((0, M_pad - M), (0, 0)))

    grid = (M_pad // TM,)

    # Explicit scoped-VMEM budget: without this the 16 MiB default on v5e
    # (and 32 MiB on v6e/v7x) would force small tiles.
    vmem_need = (2 * TM * (K * in_sz + E_pad * out_sz)
                 + 2 * K * E_pad * in_sz + (1 << 20))
    vmem_limit = int(min(vmem_cap, max(2 * vmem_need, 32 << 20)))

    cost = pl.CostEstimate(
        flops=2 * M_pad * K * E_pad,
        transcendentals=0,
        bytes_accessed=(M_pad * K * in_sz
                        + K * E_pad * in_sz
                        + E_pad * 4
                        + M_pad * E_pad * out_sz),
    )

    out_flat = pl.pallas_call(
        _proj_kernel,
        out_shape=jax.ShapeDtypeStruct((M_pad, E_pad), out_dtype),
        grid_spec=pltpu.PrefetchScalarGridSpec(
            num_scalar_prefetch=0,
            grid=grid,
            in_specs=[
                pl.BlockSpec((TM, K), lambda i: (i, 0)),       # streamed patches
                pl.BlockSpec((K, E_pad), lambda i: (0, 0)),    # resident weight
                pl.BlockSpec((1, E_pad), lambda i: (0, 0)),    # resident bias
            ],
            out_specs=pl.BlockSpec((TM, E_pad), lambda i: (i, 0)),
        ),
        compiler_params=pltpu.CompilerParams(
            dimension_semantics=("parallel",),          # shard M tiles across TCs
            vmem_limit_bytes=vmem_limit,
            allow_input_fusion=[True, False, False],    # fuse patchify into input DMA
        ),
        cost_estimate=cost,
    )(patches, w_flat, b_row)

    # Only pay the slice pass when padding actually exists.
    if M_pad != M or E_pad != E:
        out_flat = out_flat[:M, :E]

    if return_tokens:
        # Channels-last token layout (B, Hp*Wp, E): no extra HBM transpose.
        return out_flat.reshape(B, Hp * Wp, E)

    # NCHW conv-output layout (B, E, Hp, Wp) to match the PyTorch module.
    out = out_flat.reshape(B, Hp, Wp, E)
    return jnp.transpose(out, (0, 3, 1, 2))


if __name__ == "__main__":
    # Small shapes consistent with the module: img_size=16, patch_size=8,
    # in_chans=4, embed_dim=32, batch=2.
    B, C, H, W = 2, 4, 16, 16
    patch_size = (8, 8)
    embed_dim = 32

    key = jax.random.PRNGKey(0)
    kx, kw, kb = jax.random.split(key, 3)

    x = jax.random.normal(kx, (B, C, H, W), dtype=jnp.float32)
    # Conv2d-shaped parameters: (embed_dim, in_chans, ph, pw)
    weight = jax.random.normal(kw, (embed_dim, C, *patch_size), dtype=jnp.float32) * 0.02
    bias = jax.random.normal(kb, (embed_dim,), dtype=jnp.float32) * 0.02

    # Reference: lax conv with stride == kernel (same semantics as nn.Conv2d).
    ref = jax.lax.conv_general_dilated(
        x, weight, window_strides=patch_size, padding="VALID",
        dimension_numbers=("NCHW", "OIHW", "NCHW"),
    ) + bias.reshape(1, embed_dim, 1, 1)

    # Exact-precision path (f32 streams) — matches the PyTorch Conv2d.
    out_f32 = patch_embed_forward(x, weight, bias, patch_size,
                                  input_dtype=jnp.float32)
    out_f32 = jax.block_until_ready(out_f32)
    assert out_f32.shape == (B, embed_dim, H // patch_size[0], W // patch_size[1])
    assert jnp.allclose(out_f32, ref, atol=1e-4, rtol=1e-4)

    # Default perf path: bf16 input streams, f32 accumulation, f32 output.
    out_bf16 = patch_embed_forward(x, weight, bias, patch_size)
    out_bf16 = jax.block_until_ready(out_bf16)
    assert out_bf16.shape == out_f32.shape
    assert jnp.allclose(out_bf16, ref, atol=2e-2, rtol=2e-2)

    # Token-layout output (skips the trailing NCHW transpose).
    tokens = patch_embed_forward(x, weight, bias, patch_size,
                                 return_tokens=True, input_dtype=jnp.float32)
    tokens = jax.block_until_ready(tokens)
    ref_tokens = jnp.transpose(ref, (0, 2, 3, 1)).reshape(B, -1, embed_dim)
    assert jnp.allclose(tokens, ref_tokens, atol=1e-4, rtol=1e-4)

    print("KERNEL_OK")
</pallas_src>

<mosaic_0001>
module attributes {stable_mosaic.version = 11 : i64} {
  func.func @_proj_kernel(%arg0: i32, %arg1: memref<8x256xf32, #tpu.memory_space<vmem>>, %arg2: memref<256x32xf32, #tpu.memory_space<vmem>>, %arg3: memref<1x32xf32, #tpu.memory_space<vmem>>, %arg4: memref<8x32xf32, #tpu.memory_space<vmem>>) attributes {dimension_semantics = [#tpu.dimension_semantics<parallel>], iteration_bounds = array<i64: 1>, scalar_prefetch = 0 : i64, scratch_operands = 0 : i64, tpu.core_type = #tpu.core_type<tc>, window_params = [{transform_indices = @transform_0, window_bounds = array<i64: 8, 256>}, {pipeline_mode = #tpu.pipeline_mode<synchronous>, transform_indices = @transform_1, window_bounds = array<i64: 256, 32>}, {pipeline_mode = #tpu.pipeline_mode<synchronous>, transform_indices = @transform_2, window_bounds = array<i64: 1, 32>}, {transform_indices = @transform_3, window_bounds = array<i64: 8, 32>}]} {
    %c0 = arith.constant 0 : index
    %c0_0 = arith.constant 0 : index
    %0 = vector.load %arg1[%c0, %c0_0] : memref<8x256xf32, #tpu.memory_space<vmem>>, vector<8x256xf32>
    %c0_1 = arith.constant 0 : index
    %c0_2 = arith.constant 0 : index
    %1 = vector.load %arg2[%c0_1, %c0_2] : memref<256x32xf32, #tpu.memory_space<vmem>>, vector<256x32xf32>
    %cst = arith.constant dense<0.000000e+00> : vector<8x32xf32>
    %2 = tpu.matmul %0, %1, %cst {dimension_numbers = #tpu.dot_dimension_numbers<[1], [0], [0], [1], [0, 0, 1, 1], [], []>} : vector<8x256xf32>, vector<256x32xf32>, vector<8x32xf32> -> vector<8x32xf32>
    %c0_3 = arith.constant 0 : index
    %c0_4 = arith.constant 0 : index
    %3 = vector.load %arg3[%c0_3, %c0_4] : memref<1x32xf32, #tpu.memory_space<vmem>>, vector<1x32xf32>
    %4 = vector.broadcast %3 : vector<1x32xf32> to vector<8x32xf32>
    %5 = arith.addf %2, %4 : vector<8x32xf32>
    %c0_5 = arith.constant 0 : index
    %c0_6 = arith.constant 0 : index
    %6 = vector.load %arg4[%c0_5, %c0_6] : memref<8x32xf32, #tpu.memory_space<vmem>>, vector<8x32xf32>
    tpu.vector_store %arg4[%c0_5, %c0_6], %5 {strides = array<i32>} : memref<8x32xf32, #tpu.memory_space<vmem>>, vector<8x32xf32>,
    return
  }
  func.func @transform_0(%arg0: i32) -> (i32, i32) {
    %c0_i32 = arith.constant 0 : i32
    %c0_i32_0 = arith.constant 0 : i32
    return %arg0, %c0_i32 : i32, i32
  }
  func.func @transform_1(%arg0: i32) -> (i32, i32) {
    %c0_i32 = arith.constant 0 : i32
    %c0_i32_0 = arith.constant 0 : i32
    %c0_i32_1 = arith.constant 0 : i32
    return %c0_i32, %c0_i32_0 : i32, i32
  }
  func.func @transform_2(%arg0: i32) -> (i32, i32) {
    %c0_i32 = arith.constant 0 : i32
    %c0_i32_0 = arith.constant 0 : i32
    %c0_i32_1 = arith.constant 0 : i32
    return %c0_i32, %c0_i32_0 : i32, i32
  }
  func.func @transform_3(%arg0: i32) -> (i32, i32) {
    %c0_i32 = arith.constant 0 : i32
    %c0_i32_0 = arith.constant 0 : i32
    return %arg0, %c0_i32 : i32, i32
  }
}

</mosaic_0001>

<bundles_post_ra>
// kernel: tpu_custom_call.1
= control target key start
LH: loop header
LB: loop body
LE: loop exit
PB: predicated region body
PF: predicated region fallthrough
CT: control target
= control target key end

     0   :  { %s373_s0 = inlined_call_operand.vmem [shape: f32[8,256], index: 0, kind: input, shape index: {}]   ;;  %s374_s1 = inlined_call_operand.vmem [shape: f32[256,32], index: 1, kind: input, shape index: {}]   ;;  %s375_s2 = inlined_call_operand.vmem [shape: f32[1,32], index: 2, kind: input, shape index: {}]   ;;  %s376_s3 = inlined_call_operand.hbm [shape: f32[8,32], index: 3, kind: output, shape index: {}]  }
   0x1   :  { %v33_v0 = vld [vmem:[%s374_s1 + $0x80] sm:$0xff]  ;;  %v34_v1 = vld [vmem:[%s374_s1 + $0x88] sm:$0xff]  ;;  %v35_v5 = vld [vmem:[%s374_s1 + $0x90] sm:$0xff] }
   0x2   :  { %v17_v2 = vld [vmem:[%s374_s1] sm:$0xff]  ;;  %v178_v3 = vpack.c.bf16 %v34_v1, %v33_v0  ;;  %v18_v4 = vld [vmem:[%s374_s1 + $0x8] sm:$0xff]  ;;  %v36_v6 = vld [vmem:[%s374_s1 + $0x98] sm:$0xff] }
   0x3   :  { %v180_v7 = vpack.c.bf16 %v18_v4, %v17_v2  ;;  %v182_v8 = vpack.c.bf16 %v36_v6, %v35_v5  ;;  %v19_v9 = vld [vmem:[%s374_s1 + $0x10] sm:$0xff]  ;;  %v20_v10 = vld [vmem:[%s374_s1 + $0x18] sm:$0xff]  ;;  %v37_v11 = vld [vmem:[%s374_s1 + $0xa0] sm:$0xff] }
   0x4   :  { %179 = vmatprep.subr.bf16.mxu0 %v178_v3  ;;  %v38_v12 = vld [vmem:[%s374_s1 + $0xa8] sm:$0xff]  ;;  %v184_v13 = vpack.c.bf16 %v20_v10, %v19_v9  ;;  %v21_v15 = vld [vmem:[%s374_s1 + $0x20] sm:$0xff]  ;;  %v39_v17 = vld [vmem:[%s374_s1 + $0xb0] sm:$0xff] }
   0x5   :  { %181 = vmatpush3.bf16.msra.mxu0 %v180_v7  ;;  %v186_v14 = vpack.c.bf16 %v38_v12, %v37_v11  ;;  %v22_v16 = vld [vmem:[%s374_s1 + $0x28] sm:$0xff]  ;;  %v40_v18 = vld [vmem:[%s374_s1 + $0xb8] sm:$0xff]  ;;  %v23_v21 = vld [vmem:[%s374_s1 + $0x30] sm:$0xff] }
   0x6   :  { %183 = vmatprep.subr.bf16.mxu0 %v182_v8  ;;  %v188_v19 = vpack.c.bf16 %v22_v16, %v21_v15  ;;  %v190_v20 = vpack.c.bf16 %v40_v18, %v39_v17  ;;  %v24_v22 = vld [vmem:[%s374_s1 + $0x38] sm:$0xff]  ;;  %v41_v23 = vld [vmem:[%s374_s1 + $0xc0] sm:$0xff]  ;;  %v42_v24 = vld [vmem:[%s374_s1 + $0xc8] sm:$0xff] }
   0x7   :  { %v16_v25 = vld [vmem:[%s373_s0 + $0x8] sm:$0xff] }
   0x8   :  { %120 = vmatprep.mubr.f32.mxu0 %v16_v25 }
   0x9   :  { %185 = vmatpush3.bf16.msra.mxu0 %v184_v13 }
   0xa   :  { %187 = vmatprep.subr.bf16.mxu0 %v186_v14 }
   0xb   :  { %8 = vsyncpa [#allocation3], 0  ;;  %v192_v26 = vpack.c.bf16 %v24_v22, %v23_v21  ;;  %v194_v27 = vpack.c.bf16 %v42_v24, %v41_v23  ;;  %v25_v28 = vld [vmem:[%s374_s1 + $0x40] sm:$0xff]  ;;  %v26_v29 = vld [vmem:[%s374_s1 + $0x48] sm:$0xff]  ;;  %s235_s28 = smov [#allocation2]   ;;  %vm126_vm0 = vcmask 261120  }
   0xc   :  { %v43_v30 = vld [vmem:[%s374_s1 + $0xd0] sm:$0xff]  ;;  %v44_v31 = vld [vmem:[%s374_s1 + $0xd8] sm:$0xff]  ;;  %v196_v32 = vpack.c.bf16 %v26_v29, %v25_v28  ;;  %v45_v36 = vld [vmem:[%s374_s1 + $0xe0] sm:$0xff]  ;;  %s134_s29 = sshll.u32 %s235_s28, 4  ;;  %s135_s29 = int_to_ptr.vmem [resolvable:$true] %s134_s29 }
   0xd   :  { %189 = vmatpush3.bf16.msra.mxu0 %v188_v19  ;;  %v198_v33 = vpack.c.bf16 %v44_v31, %v43_v30  ;;  %v27_v34 = vld [vmem:[%s374_s1 + $0x50] sm:$0xff]  ;;  %v28_v35 = vld [vmem:[%s374_s1 + $0x58] sm:$0xff]  ;;  %v46_v37 = vld [vmem:[%s374_s1 + $0xe8] sm:$0xff]  ;;  %p216_p1 = scmp.lt.s32.totalorder %s135_s29, %s135_s29 }
   0xe   :  { %191 = vmatprep.subr.bf16.mxu0 %v190_v20  ;;  %v200_v38 = vpack.c.bf16 %v28_v35, %v27_v34  ;;  %v202_v39 = vpack.c.bf16 %v46_v37, %v45_v36  ;;  %v29_v40 = vld [vmem:[%s374_s1 + $0x60] sm:$0xff]  ;;  %v30_v41 = vld [vmem:[%s374_s1 + $0x68] sm:$0xff]  ;;  %v47_v42 = vld [vmem:[%s374_s1 + $0xf0] sm:$0xff] }
   0xf   :  { %v48_v43 = vld [vmem:[%s374_s1 + $0xf8] sm:$0xff]  ;;  %v204_v44 = vpack.c.bf16 %v30_v41, %v29_v40  ;;  %v31_v46 = vld [vmem:[%s374_s1 + $0x70] sm:$0xff]  ;;  %v15_v49 = vld [vmem:[%s373_s0] sm:$0xff] }
  0x10   :  { %v206_v45 = vpack.c.bf16 %v48_v43, %v47_v42  ;;  %v32_v47 = vld [vmem:[%s374_s1 + $0x78] sm:$0xff]  ;;  %v142_v51 = vld [vmem:[%s375_s2] ss:$0 sm:$0xff]  ;;  %s211_s1 = scalar_lea.vmem %s135_s29, 128 }
  0x11   :  { %193 = vmatpush3.bf16.msra.mxu0 %v192_v26  ;;  %v208_v48 = vpack.c.bf16 %v32_v47, %v31_v46  ;;  %p212_p0 = scmp.ne.s32.totalorder %s135_s29, %s211_s1  ;;  %p217_p2 = scmp.lt.s32.totalorder %s211_s1, %s211_s1 }
  0x12   :  { %195 = vmatprep.subr.bf16.mxu0 %v194_v27 }
  0x13   :  { %p218_p3 = por %p217_p2, %p216_p1 }
  0x15   :  { %197 = vmatpush3.bf16.msra.mxu0 %v196_v32  ;;  %p219_p4 = pnand %p218_p3, %p212_p0 }
  0x16   :  { %199 = vmatprep.subr.bf16.mxu0 %v198_v33 }
  0x19   :  { %201 = vmatpush3.bf16.msra.mxu0 %v200_v38 }
  0x1a   :  { %203 = vmatprep.subr.bf16.mxu0 %v202_v39 }
  0x1d   :  { %205 = vmatpush3.bf16.msra.mxu0 %v204_v44 }
  0x1e   :  { %207 = vmatprep.subr.bf16.mxu0 %v206_v45 }
  0x21   :  { %209 = vmatpush3.bf16.msra.mxu0 %v208_v48 }
  0x24   :  { %121 = vmatmul.mubr.f32.vlgmr.msra.gmra.mrb[0].mxu0 %v15_v49 }
  0xf7   :  { %v175_v50 = vpop.f32.mrb[0].mxu0 }
  0xf8   :  { %v176_v52 = vpop.f32.mrb[1].mxu0 }
  0xf9   :  { %v177_v53 = vadd.f32 %v176_v52, %v175_v50 }
  0xfb   :  { %v123_v54 = vadd.f32 %v177_v53, %v142_v51 }
  0xfd   :  { %127 = vst.msk [vmem:[#allocation2] sm:$0xff] %vm126_vm0, %v123_v54 }
  0xfe   :  { %222 = shalt.err (!%p219_p4)
}
  0xff   :  { %s223_s4 = scalar_lea.hbm %s376_s3, 128 }
 0x100   :  { %p224_p5 = scmp.ne.s32.totalorder %s376_s3, %s223_s4  ;;  %p227_p6 = scmp.lt.u32.totalorder %s223_s4, %s376_s3 }
 0x102   :  { %p229_p7 = pnand %p227_p6, %p224_p5 }
 0x104   :  { %232 = shalt.err (!%p229_p7)
}
 0x105   :  { %137 = dma.vmem_to_hbm [thread:$0]  %s135_s29, 128, %s376_s3, [#allocation3]  }
 0x106   :  { %233 = dma.done.wait [#allocation3], 128  }
 0x107   :  { %234 = vsyncadd [#allocation3], 4294967168 }
 0x108   :  { %141 = vsyncpa [#allocation3], 1 }

</bundles_post_ra>
